<compile_context>
chip_gen: v6e
topology: v6e:2x2x1
jax: 0.10.0
libtpu: 0.0.40
codegen_flags: <defaults>
</compile_context>

<pallas_src>
import jax
import jax.numpy as jnp
from jax.experimental import pallas as pl
from jax.experimental.pallas import tpu as pltpu

_MIB = 1024 * 1024


def lora_kernel(x_ref, a_t_ref, b_t_ref, o_ref, h_ref):
    # h = x @ A^T is only needed once per M tile; compute it on the first
    # out_features tile (j == 0) and keep it resident in VMEM scratch for the
    # remaining N tiles (x's block index is constant over j, so the x tile is
    # not re-DMA'd either).
    @pl.when(pl.program_id(1) == 0)
    def _():
        h_ref[...] = jnp.dot(x_ref[...], a_t_ref[...],
                             preferred_element_type=jnp.float32)

    h = h_ref[...]
    if jnp.dtype(b_t_ref.dtype).itemsize < 4:
        # Sub-32-bit weights (bf16/fp8): cast h so the second matmul runs
        # single-pass on the MXU (a mixed f32 LHS forces slow multi-pass f32
        # work, worst on v5e).  Accumulation stays f32.
        h = h.astype(b_t_ref.dtype)
    y = jnp.dot(h, b_t_ref[...], preferred_element_type=jnp.float32)
    o_ref[...] = y.astype(o_ref.dtype)


def _sublane_multiple(dtype):
    # f32 -> 8 rows per vreg, bf16 -> 16, int8/fp8 -> 32.
    return 8 * max(1, 4 // jnp.dtype(dtype).itemsize)


def _vmem_capacity_bytes():
    try:
        return int(pltpu.get_tpu_info().vmem_capacity_bytes)
    except Exception:
        return 64 * _MIB  # conservative fallback: v7x per-TensorCore VMEM


def _vmem_budget(vmem_phys):
    # Leave headroom for Mosaic internal scratch / semaphores / layout pads.
    if vmem_phys <= 64 * _MIB:      # v7x: 64 MiB per TensorCore
        return 50 * _MIB
    return 96 * _MIB                # v5e / v6e: 128 MiB physical


def prepare_lora_weights(A_w, B_w):
    """One-time weight prep (call once per layer, NOT per forward).

    A_w: [rank, in_features]   (nn.Linear(in_features, rank).weight)
    B_w: [out_features, rank]  (nn.Linear(rank, out_features).weight)

    Returns (A_wT_p, B_wT_p):
      A_wT_p: [in_features, rank_p]  (zero-padded, rank_p = ceil(rank/128)*128)
      B_wT_p: [rank_p, out_features]
    Zero padding is a mathematical no-op: padded h columns are 0 and padded
    B_wT rows are 0, but the padded rank dim is lane-dense (no masked ops).
    """
    rank, in_features = A_w.shape
    out_features, rank_b = B_w.shape
    assert rank_b == rank, "A/B rank mismatch"
    rank_p = ((rank + 127) // 128) * 128
    A_wT_p = jnp.zeros((in_features, rank_p), A_w.dtype).at[:, :rank].set(A_w.T)
    B_wT_p = jnp.zeros((rank_p, out_features), B_w.dtype).at[:rank, :].set(B_w.T)
    return A_wT_p, B_wT_p


def lora_forward(x, A_wT_p, B_wT_p, *, rank=None, tile_m=None, tile_n=None,
                 vmem_limit_bytes=None):
    """y = (x @ A^T) @ B^T using pre-transposed, rank-padded weights.

    x: [..., in_features] -> returns [..., out_features] in x.dtype.
    `rank` (optional) is the true, unpadded LoRA rank used for the FLOP hint.
    """
    *lead, in_features = x.shape
    assert A_wT_p.shape[0] == in_features
    rank_p = A_wT_p.shape[1]
    assert B_wT_p.shape[0] == rank_p
    out_features = B_wT_p.shape[1]
    rank_true = rank if rank is not None else rank_p

    x2 = x.reshape(-1, in_features)
    M = x2.shape[0]

    x_item = jnp.dtype(x.dtype).itemsize
    w_item = jnp.dtype(B_wT_p.dtype).itemsize
    a_item = jnp.dtype(A_wT_p.dtype).itemsize
    out_dtype = x.dtype                     # preserve module semantics
    out_item = jnp.dtype(out_dtype).itemsize
    sub = _sublane_multiple(x.dtype)

    vmem_phys = _vmem_capacity_bytes()
    budget = _vmem_budget(vmem_phys)

    # ----- M tiling -------------------------------------------------------
    if tile_m is None:
        if vmem_phys > 64 * _MIB:           # v5e / v6e (128 MiB VMEM)
            tile_m = 1024 if x_item <= 2 else 512
        else:                               # v7x
            tile_m = 512
    if tile_m >= M:
        if M >= 2 * sub:
            # Keep >= 2 blocks on the "parallel" M axis so v7x's second
            # TensorCore isn't idle (harmless on single-TC v5e/v6e).
            tile_m = ((((M + 1) // 2) + sub - 1) // sub) * sub
        else:
            tile_m = M                      # full-dim block is always legal
    else:
        tile_m = max(sub, (tile_m // sub) * sub)

    # ----- N (out_features) tiling -----------------------------------------
    if tile_n is None:
        if out_features > 2048 and out_features % 128 == 0:
            tile_n = 2048                   # shrinks y tile + B slice on v7x
        else:
            tile_n = out_features
    tile_n = min(tile_n, out_features)
    if tile_n != out_features and tile_n % 128 != 0:
        tile_n = out_features               # keep output blocks lane-dense

    # ----- fit tiles into the per-generation VMEM budget -------------------
    def _needed(tm, tn):
        b_bufs = 1 if tn >= out_features else 2
        return (2 * tm * in_features * x_item          # x double buffer
                + in_features * rank_p * a_item        # A (single buffer)
                + b_bufs * rank_p * tn * w_item        # B tile
                + 2 * tm * tn * out_item               # y double buffer
                + tm * rank_p * 4                      # h scratch (f32)
                + tm * tn * 4                          # f32 y temporary
                + 2 * _MIB)                            # slack

    for _ in range(32):
        if _needed(tile_m, tile_n) <= budget:
            break
        if tile_m > 2 * sub:
            tile_m = max(sub, ((tile_m // 2) // sub) * sub)
        elif tile_n > 128 and tile_n % 256 == 0:
            tile_n //= 2
        else:
            break

    nj = -(-out_features // tile_n)
    grid = (pl.cdiv(M, tile_m), nj)

    if vmem_limit_bytes is None:
        vmem_limit_bytes = int(min(budget,
                                   max(2 * _needed(tile_m, tile_n), 32 * _MIB)))

    # Weights with a constant block index are DMA'd once; a single VMEM copy
    # suffices.  The B slice changes with j (when nj > 1), so it keeps the
    # default double buffer for DMA/compute overlap.
    a_mode = pl.Buffered(1)
    b_mode = pl.Buffered(1) if nj == 1 else pl.Buffered(2)
    # TODO(synk): bump x to pl.Buffered(3) on v7x if profiling shows exposed
    # x DMA after the VMEM budget above leaves room.

    cost = pl.CostEstimate(
        flops=int(2 * M * rank_true * (in_features + out_features)),
        transcendentals=0,
        bytes_accessed=int(x_item * M * in_features
                           + out_item * M * out_features
                           + a_item * in_features * rank_p
                           + w_item * rank_p * out_features),
    )

    y2 = pl.pallas_call(
        lora_kernel,
        out_shape=jax.ShapeDtypeStruct((M, out_features), out_dtype),
        grid_spec=pltpu.PrefetchScalarGridSpec(
            num_scalar_prefetch=0,
            grid=grid,
            in_specs=[
                # Row tile of x; constant over j => stays resident in VMEM.
                pl.BlockSpec((tile_m, in_features), lambda i, j: (i, 0)),
                # A^T (padded rank): constant block => DMA'd once.
                pl.BlockSpec((in_features, rank_p), lambda i, j: (0, 0),
                             pipeline_mode=a_mode),
                # B^T slice for this out_features tile.
                pl.BlockSpec((rank_p, tile_n), lambda i, j: (0, j),
                             pipeline_mode=b_mode),
            ],
            # Lane-dense output tile.
            out_specs=pl.BlockSpec((tile_m, tile_n), lambda i, j: (i, j)),
            scratch_shapes=[pltpu.VMEM((tile_m, rank_p), jnp.float32)],
        ),
        compiler_params=pltpu.CompilerParams(
            # M axis can megacore-shard; N axis must run in-order on one core
            # because the h scratch computed at j == 0 is reused for j > 0.
            dimension_semantics=("parallel", "arbitrary"),
            vmem_limit_bytes=int(vmem_limit_bytes),
        ),
        cost_estimate=cost,
    )(x2, A_wT_p, B_wT_p)

    return y2.reshape(*lead, out_features)


if __name__ == "__main__":
    # Small shapes consistent with the module: Linear(in -> rank -> out).
    batch, seq = 2, 8
    in_features, rank, out_features = 32, 4, 32

    key = jax.random.PRNGKey(0)
    kx, ka, kb = jax.random.split(key, 3)

    x = jax.random.normal(kx, (batch, seq, in_features), dtype=jnp.float32)

    # Deterministic init matching the PyTorch __init__:
    #   A.weight ~ N(0, 0.02), shape [rank, in_features]
    #   B.weight = 0,          shape [out_features, rank]
    A_w = 0.02 * jax.random.normal(ka, (rank, in_features), dtype=jnp.float32)
    B_w = jnp.zeros((out_features, rank), dtype=jnp.float32)

    # Weight prep happens ONCE (hoisted out of the per-step forward).
    A_wT_p, B_wT_p = prepare_lora_weights(A_w, B_w)
    y = jax.block_until_ready(lora_forward(x, A_wT_p, B_wT_p, rank=rank))
    y_ref = (x @ A_w.T) @ B_w.T
    assert y.shape == (batch, seq, out_features)
    assert jnp.allclose(y, y_ref, atol=1e-5), "mismatch vs reference (B=0)"

    # Nonzero-B path (zero-init B makes the default output trivially zero).
    B_w_nz = 0.02 * jax.random.normal(kb, (out_features, rank),
                                      dtype=jnp.float32)
    A_wT_p2, B_wT_p2 = prepare_lora_weights(A_w, B_w_nz)
    y2 = jax.block_until_ready(lora_forward(x, A_wT_p2, B_wT_p2, rank=rank))
    y2_ref = (x @ A_w.T) @ B_w_nz.T
    assert jnp.allclose(y2, y2_ref, atol=1e-5), "mismatch vs reference (B!=0)"

    # bf16 path: exercises the h -> bf16 cast before the second matmul.
    x_bf = x.astype(jnp.bfloat16)
    A_bf, B_bf = A_w.astype(jnp.bfloat16), B_w_nz.astype(jnp.bfloat16)
    A_wT_p3, B_wT_p3 = prepare_lora_weights(A_bf, B_bf)
    y3 = jax.block_until_ready(lora_forward(x_bf, A_wT_p3, B_wT_p3, rank=rank))
    y3_ref = (x_bf.astype(jnp.float32) @ A_bf.T.astype(jnp.float32)) \
             @ B_bf.T.astype(jnp.float32)
    assert jnp.allclose(y3.astype(jnp.float32), y3_ref,
                        rtol=1e-1, atol=1e-3), "mismatch vs reference (bf16)"

    # Multi N-tile path: forces grid=(4, 2) so the h scratch is reused across
    # out_features tiles (j > 0) under the "arbitrary" inner axis.
    in2, out2, rank2 = 64, 256, 4
    k1, k2, k3 = jax.random.split(jax.random.PRNGKey(2), 3)
    x4 = jax.random.normal(k1, (2, 16, in2), dtype=jnp.float32)
    A4 = 0.02 * jax.random.normal(k2, (rank2, in2), dtype=jnp.float32)
    B4 = 0.02 * jax.random.normal(k3, (out2, rank2), dtype=jnp.float32)
    A_wT_p4, B_wT_p4 = prepare_lora_weights(A4, B4)
    y4 = jax.block_until_ready(
        lora_forward(x4, A_wT_p4, B_wT_p4, rank=rank2, tile_m=8, tile_n=128))
    y4_ref = (x4 @ A4.T) @ B4.T
    assert jnp.allclose(y4, y4_ref, atol=1e-5), "mismatch vs reference (N-tiled)"

    print("KERNEL_OK")
</pallas_src>

<mosaic_0001>
module attributes {stable_mosaic.version = 11 : i64} {
  func.func @lora_kernel(%arg0: i32, %arg1: i32, %arg2: memref<8x32xf32, #tpu.memory_space<vmem>>, %arg3: memref<32x128xf32, #tpu.memory_space<vmem>>, %arg4: memref<128x32xf32, #tpu.memory_space<vmem>>, %arg5: memref<8x32xf32, #tpu.memory_space<vmem>>, %arg6: memref<8x128xf32, #tpu.memory_space<vmem>>) attributes {dimension_semantics = [#tpu.dimension_semantics<parallel>, #tpu.dimension_semantics<arbitrary>], iteration_bounds = array<i64: 2, 1>, scalar_prefetch = 0 : i64, scratch_operands = 1 : i64, tpu.core_type = #tpu.core_type<tc>, window_params = [{transform_indices = @transform_0, window_bounds = array<i64: 8, 32>}, {pipeline_mode = #tpu.pipeline_mode<synchronous>, transform_indices = @transform_1, window_bounds = array<i64: 32, 128>}, {pipeline_mode = #tpu.pipeline_mode<synchronous>, transform_indices = @transform_2, window_bounds = array<i64: 128, 32>}, {transform_indices = @transform_3, window_bounds = array<i64: 8, 32>}]} {
    %c0_i32 = arith.constant 0 : i32
    %0 = arith.cmpi eq, %arg1, %c0_i32 : i32
    %1 = arith.extui %0 : i1 to i32
    %c0_i32_0 = arith.constant 0 : i32
    %2 = arith.cmpi ne, %1, %c0_i32_0 : i32
    scf.if %2 {
      %c0_6 = arith.constant 0 : index
      %c0_7 = arith.constant 0 : index
      %7 = vector.load %arg2[%c0_6, %c0_7] : memref<8x32xf32, #tpu.memory_space<vmem>>, vector<8x32xf32>
      %c0_8 = arith.constant 0 : index
      %c0_9 = arith.constant 0 : index
      %8 = vector.load %arg3[%c0_8, %c0_9] : memref<32x128xf32, #tpu.memory_space<vmem>>, vector<32x128xf32>
      %cst_10 = arith.constant dense<0.000000e+00> : vector<8x128xf32>
      %9 = tpu.matmul %7, %8, %cst_10 {dimension_numbers = #tpu.dot_dimension_numbers<[1], [0], [0], [1], [0, 0, 1, 1], [], []>} : vector<8x32xf32>, vector<32x128xf32>, vector<8x128xf32> -> vector<8x128xf32>
      %c0_11 = arith.constant 0 : index
      %c0_12 = arith.constant 0 : index
      %10 = vector.load %arg6[%c0_11, %c0_12] : memref<8x128xf32, #tpu.memory_space<vmem>>, vector<8x128xf32>
      tpu.vector_store %arg6[%c0_11, %c0_12], %9 {strides = array<i32>} : memref<8x128xf32, #tpu.memory_space<vmem>>, vector<8x128xf32>,
    } else {
    }
    %c0 = arith.constant 0 : index
    %c0_1 = arith.constant 0 : index
    %3 = vector.load %arg6[%c0, %c0_1] : memref<8x128xf32, #tpu.memory_space<vmem>>, vector<8x128xf32>
    %c0_2 = arith.constant 0 : index
    %c0_3 = arith.constant 0 : index
    %4 = vector.load %arg4[%c0_2, %c0_3] : memref<128x32xf32, #tpu.memory_space<vmem>>, vector<128x32xf32>
    %cst = arith.constant dense<0.000000e+00> : vector<8x32xf32>
    %5 = tpu.matmul %3, %4, %cst {dimension_numbers = #tpu.dot_dimension_numbers<[1], [0], [0], [1], [0, 0, 1, 1], [], []>} : vector<8x128xf32>, vector<128x32xf32>, vector<8x32xf32> -> vector<8x32xf32>
    %c0_4 = arith.constant 0 : index
    %c0_5 = arith.constant 0 : index
    %6 = vector.load %arg5[%c0_4, %c0_5] : memref<8x32xf32, #tpu.memory_space<vmem>>, vector<8x32xf32>
    tpu.vector_store %arg5[%c0_4, %c0_5], %5 {strides = array<i32>} : memref<8x32xf32, #tpu.memory_space<vmem>>, vector<8x32xf32>,
    return
  }
  func.func @transform_0(%arg0: i32, %arg1: i32) -> (i32, i32) {
    %c0_i32 = arith.constant 0 : i32
    %c0_i32_0 = arith.constant 0 : i32
    return %arg0, %c0_i32 : i32, i32
  }
  func.func @transform_1(%arg0: i32, %arg1: i32) -> (i32, i32) {
    %c0_i32 = arith.constant 0 : i32
    %c0_i32_0 = arith.constant 0 : i32
    %c0_i32_1 = arith.constant 0 : i32
    return %c0_i32, %c0_i32_0 : i32, i32
  }
  func.func @transform_2(%arg0: i32, %arg1: i32) -> (i32, i32) {
    %c0_i32 = arith.constant 0 : i32
    %c0_i32_0 = arith.constant 0 : i32
    return %c0_i32, %arg1 : i32, i32
  }
  func.func @transform_3(%arg0: i32, %arg1: i32) -> (i32, i32) {
    %c0_i32 = arith.constant 0 : i32
    return %arg0, %arg1 : i32, i32
  }
}

</mosaic_0001>

<bundles_post_ra>
// kernel: tpu_custom_call.1
= control target key start
LH: loop header
LB: loop body
LE: loop exit
PB: predicated region body
PF: predicated region fallthrough
CT: control target
= control target key end

     0   :  { %8 = vsyncpa [#allocation4], 0  ;;  %s904_s0 = inlined_call_operand.vmem [shape: f32[16,32], index: 0, kind: input, shape index: {}]   ;;  %s905_s1 = inlined_call_operand.vmem [shape: f32[32,128], index: 1, kind: input, shape index: {}]   ;;  %s906_s2 = inlined_call_operand.vmem [shape: f32[128,32], index: 2, kind: input, shape index: {}]   ;;  %s907_s3 = inlined_call_operand.hbm [shape: f32[16,32], index: 3, kind: output, shape index: {}]  }
   0x1   :  { %10 = vsyncpa [#allocation4 + $0x1], 0  ;;  %s707_s12 = smov 0   ;;  %s709_s13 = smov 0  }
   0x2   :  { %s711_s14 = smov 0   ;;  %s713_s15 = smov 0  }
   0x3   :  { %s715_s16 = smov 0   ;;  %s717_s17 = smov 0  }
   0x4 LB: > { %s468_s18 = sadd.s32 4294967295, %s682_s17   ;;  %s469_s19 = sadd.s32 4294967294, %s682_s17   ;;  %s682_s17 = sphi %s717_s17, %s16_s17   ;;  %s678_s16 = sphi %s715_s16, %s914_s16   ;;  %s674_s15 = sphi %s713_s15, %s913_s15   ;;  %s670_s14 = sphi %s711_s14, %s912_s14   ;;  %s666_s13 = sphi %s709_s13, %s911_s13   ;;  %s662_s12 = sphi %s707_s12, %s910_s12  }
   0x5   : > { %s28_s20 = sadd.s32 1, %s678_s16  ;;  %s110_s21 = sadd.s32 1, %s670_s14 }
   0x6   : > { %p30_p0 = scmp.ge.s32.totalorder %s28_s20, 2  ;;  %p120_p1 = scmp.ne.s32.totalorder %s670_s14, %s666_s13 }
   0x7   : > { %p121_p2 = scmp.eq.s32.totalorder %s468_s18, 1  ;;  %p126_p3 = scmp.ne.s32.totalorder %s666_s13, %s662_s12 }
   0x8   : > { %s916_s20 = smov (%p30_p0, %s28_s20), 0  ;;  %p127_p5 = scmp.eq.s32.totalorder %s469_s19, 1 }
   0x9   : > { %p747_p4 = por %p121_p2, %p120_p1  ;;  %s105_s23 = ssub.s32 %s678_s16, %s916_s20 }
   0xa   : > { %p473_p6 = scmp.ge.s32.totalorder %s682_s17, 1  ;;  %p108_p7 = scmp.eq.s32.totalorder %s105_s23, 0 }
   0xb   : > { %p754_p8 = por %p127_p5, %p126_p3  ;;  %p162_p9 = scmp.lt.s32.totalorder %s682_s17, 3 }
   0xc   : > { %s760_s25 = scalar_select %p108_p7, %s670_s14, %s110_s21  }
   0xd   : > { %p163_p10 = pnand %p473_p6, %p162_p9 }
   0xe   : > { %p189_p11 = scmp.lt.s32.totalorder (!%p163_p10), %s674_s15, 1  ;;  %s478_s18 = sshll.u32 (!%p163_p10), %s674_s15, 7 }
   0xf   : > { %166 = sbr.rel (%p163_p10) target bundleno = 429 (0x1ad), region = 32 }
  0x14   : > { %v205_v0 = vld [vmem:[%s905_s1 + $0x18] sm:$0xff]  ;;  %v684_v1 = vmov 0.0   ;;  %v204_v2 = vld [vmem:[%s905_s1 + $0x10] sm:$0xff]  ;;  %vm685_vm0 = vmmov 0   ;;  %s190_s5 = scalar_select %p189_p11, %s674_s15, 1  ;;  %v203_v5 = vld [vmem:[%s905_s1 + $0x8] sm:$0xff] }
  0x15   : > { %503 = vmatprep.subr.mxu0 %v684_v1  ;;  %511 = vmatprep.mubr.msk.f32.mxu0 %vm685_vm0, %v684_v1  ;;  %v297_v3 = vld [vmem:[%s906_s2 + $0x78] sm:$0xff]  ;;  %v296_v4 = vld [vmem:[%s906_s2 + $0x70] sm:$0xff]  ;;  %v295_v6 = vld [vmem:[%s906_s2 + $0x68] sm:$0xff]  ;;  %vm206_vm1 = vcmask 261120   ;;  %s686_s15 = smov [#allocation3]  }
  0x16   : > { %504 = vmatpush3.msra.mxu0 %v205_v0  ;;  %514 = vmatprep.subr.mxu1 %v684_v1  ;;  %s475_s10 = sshll.u32 %s190_s5, 3  ;;  %v202_v7 = vld [vmem:[%s905_s1] sm:$0xff]  ;;  %v293_v10 = vld [vmem:[%s906_s2 + $0x58] sm:$0xff]  ;;  %v292_v11 = vld [vmem:[%s906_s2 + $0x50] sm:$0xff]  ;;  %s610_s30 = sshll.u32 %s686_s15, 4  ;;  %s611_s30 = int_to_ptr.vmem [resolvable:$false] %s610_s30 }
  0x17   : > { %505 = vmatprep.subr.mxu0 %v684_v1  ;;  %515 = vmatpush3.msra.mxu1 %v297_v3  ;;  %s192_s27 = scalar_lea.vmem %s904_s0, %s475_s10  ;;  %v294_v9 = vld [vmem:[%s906_s2 + $0x60] sm:$0xff]  ;;  %v291_v12 = vld [vmem:[%s906_s2 + $0x48] sm:$0xff]  ;;  %v289_v14 = vld [vmem:[%s906_s2 + $0x38] sm:$0xff]  ;;  %s186_s10 = sand.u32 1, %s666_s13  }
  0x18   : > { %506 = vmatpush3.msra.mxu0 %v204_v2  ;;  %516 = vmatprep.subr.mxu1 %v684_v1  ;;  %v201_v8 = vld [vmem:[%s192_s27] sm:$0xff]  ;;  %v288_v15 = vld [vmem:[%s906_s2 + $0x30] sm:$0xff]  ;;  %v287_v16 = vld [vmem:[%s906_s2 + $0x28] sm:$0xff]  ;;  %s474_s11 = sshll.u32 %s186_s10, 3  ;;  %s857_s27 = scalar_lea.hbm %s907_s3, %s478_s18 }
  0x19   : > { %507 = vmatprep.subr.mxu0 %v684_v1  ;;  %517 = vmatpush3.msra.mxu1 %v296_v4  ;;  %v290_v13 = vld [vmem:[%s906_s2 + $0x40] sm:$0xff]  ;;  %v285_v18 = vld [vmem:[%s906_s2 + $0x18] sm:$0xff]  ;;  %v284_v19 = vld [vmem:[%s906_s2 + $0x10] sm:$0xff]  ;;  %s188_s19 = scalar_lea.vmem [#allocation3], %s474_s11  ;;  %s371_s28 = scalar_lea.sflag [#allocation4], %s186_s10 }
  0x1a   : > { %508 = vmatpush3.msra.mxu0 %v203_v5  ;;  %518 = vmatprep.subr.mxu1 %v684_v1  ;;  %v286_v17 = vld [vmem:[%s906_s2 + $0x20] sm:$0xff]  ;;  %v283_v20 = vld [vmem:[%s906_s2 + $0x8] sm:$0xff]  ;;  %s385_s21 = sshll.u32 %s188_s19, 4  ;;  %s612_s4 = scalar_lea.vmem %s611_s30, 256  ;;  %s859_s21 = int_to_ptr.vmem [resolvable:$true] %s385_s21 }
  0x1b   : > { %509 = vmatprep.subr.mxu0 %v684_v1  ;;  %519 = vmatpush3.msra.mxu1 %v295_v6  ;;  %v282_v21 = vld [vmem:[%s906_s2] sm:$0xff]  ;;  %s606_s29 = scalar_lea.vmem %s859_s21, 128  ;;  %p613_p1 = scmp.lt.s32.totalorder %s859_s21, %s611_s30 }
  0x1c   : > { %510 = vmatpush3.msra.mxu0 %v202_v7  ;;  %520 = vmatprep.subr.mxu1 %v684_v1  ;;  %p607_p12 = scmp.ne.s32.totalorder %s859_s21, %s606_s29  ;;  %p614_p2 = scmp.lt.s32.totalorder %s612_s4, %s606_s29 }
  0x1d   : > { %512 = vmatmul.mubr.msk.f32.vlgmr.msra.gmra.mxu0 %vm206_vm1, %v201_v8  ;;  %521 = vmatpush3.msra.mxu1 %v294_v9 }
  0x1e   : > { %522 = vmatprep.subr.mxu1 %v684_v1  ;;  %546 = vmatprep.mubr.msk.f32.mxu1 %vm685_vm0, %v684_v1  ;;  %p608_p13 = pnand %p607_p12, %p747_p4  ;;  %p615_p3 = por %p614_p2, %p613_p1 }
  0x1f   : > { %523 = vmatpush3.msra.mxu1 %v293_v10 }
  0x20   : > { %524 = vmatprep.subr.mxu1 %v684_v1  ;;  %p609_p0 = pneg %p608_p13 }
  0x21   : > { %525 = vmatpush3.msra.mxu1 %v292_v11 }
  0x22   : > { %526 = vmatprep.subr.mxu1 %v684_v1  ;;  %p616_p5 = pnand %p615_p3, %p609_p0 }
  0x23   : > { %527 = vmatpush3.msra.mxu1 %v291_v12 }
  0x24   : > { %528 = vmatprep.subr.mxu1 %v684_v1 }
  0x25   : > { %529 = vmatpush3.msra.mxu1 %v290_v13 }
  0x26   : > { %530 = vmatprep.subr.mxu1 %v684_v1 }
  0x27   : > { %531 = vmatpush3.msra.mxu1 %v289_v14 }
  0x28   : > { %532 = vmatprep.subr.mxu1 %v684_v1 }
  0x29   : > { %533 = vmatpush3.msra.mxu1 %v288_v15 }
  0x2a   : > { %534 = vmatprep.subr.mxu1 %v684_v1 }
  0x2b   : > { %535 = vmatpush3.msra.mxu1 %v287_v16 }
  0x2c   : > { %536 = vmatprep.subr.mxu1 %v684_v1 }
  0x2d   : > { %537 = vmatpush3.msra.mxu1 %v286_v17 }
  0x2e   : > { %538 = vmatprep.subr.mxu1 %v684_v1 }
  0x2f   : > { %539 = vmatpush3.msra.mxu1 %v285_v18 }
  0x30   : > { %540 = vmatprep.subr.mxu1 %v684_v1 }
  0x31   : > { %541 = vmatpush3.msra.mxu1 %v284_v19 }
  0x32   : > { %542 = vmatprep.subr.mxu1 %v684_v1 }
  0x33   : > { %543 = vmatpush3.msra.mxu1 %v283_v20 }
  0x34   : > { %544 = vmatprep.subr.mxu1 %v684_v1 }
  0x35   : > { %545 = vmatpush3.msra.mxu1 %v282_v21 }
  0xdd   : > { %v276_v22 = vpop.f32.mrf.mxu0 }
  0xde   : > { %547 = vmatmul.mubr.f32.vlgmr.msra.gmra.mxu1 %v276_v22 }
  0xdf   : > { %v513_v23 = vpop.f32.mrf.mxu0 }
 0x19e   : > { %v364_v24 = vpop.f32.mrf.mxu1 }
 0x19f   : > { %369 = vst.msk [vmem:[%s188_s19] sm:$0xff] %vm206_vm1, %v364_v24 }
 0x1a0   : > { %v548_v25 = vpop.f32.mrf.mxu1 }
 0x1a1   : > { %619 = shalt.err (!%p616_p5)
}
 0x1a2   : > { %s620_s5 = scalar_lea.hbm %s857_s27, 128  ;;  %s624_s8 = scalar_lea.hbm %s907_s3, 256 }
 0x1a3   : > { %p621_p6 = scmp.ne.s32.totalorder %s857_s27, %s620_s5  ;;  %p625_p10 = scmp.lt.s32.totalorder %s857_s27, %s907_s3 }
 0x1a4   : > { %p626_p11 = scmp.lt.s32.totalorder %s624_s8, %s620_s5 }
 0x1a5   : > { %p622_p7 = pnand %p621_p6, %p747_p4 }
 0x1a6   : > { %p627_p12 = por %p626_p11, %p625_p10 }
 0x1a7   : > { %p623_p9 = pneg %p622_p7 }
 0x1a9   : > { %p628_p13 = pnand %p627_p12, %p623_p9 }
 0x1ab   : > { %631 = shalt.err (!%p628_p13)
}
 0x1ac   : > { %549 = dma.vmem_to_hbm [thread:$0]  (%p747_p4), %s859_s21, 128, %s857_s27, %s371_s28  }
 0x1ad PF: > { %p555_p0 = scmp.ge.s32.totalorder %s682_s17, 2  ;;  %s397_s11 = sand.u32 1, %s662_s12  }
 0x1ae   : > { %s398_s18 = scalar_lea.sflag [#allocation4], %s397_s11 }
 0x1af   : > { %p552_p1 = pnand %p555_p0, %p754_p8 }
 0x1b1   : > { %p553_p2 = pneg %p552_p1 }
 0x1b3   : > { %657 = dma.done.wait (%p553_p2), %s398_s18, 128  }
 0x1b4   : > { %659 = vsyncadd (%p553_p2), %s398_s18, 4294967168  ;;  %s16_s17 = sadd.s32 1, %s682_s17   ;;  %s910_s12 = smov %s666_s13 }
 0x1b5   : > { %p13_p3 = scmp.ge.s32.totalorder %s16_s17, 4   ;;  %s911_s13 = smov %s670_s14 }
 0x1b6   : > { %s912_s14 = smov %s760_s25  ;;  %s913_s15 = smov %s678_s16 }
 0x1b7   : > { %s914_s16 = smov %s916_s20  ;;  %15 = sbr.rel (!%p13_p3) target bundleno = 4 (0x4), region = 74 }
 0x1bc   :  { %403 = vsyncpa [#allocation4], 1 }
 0x1bd   :  { %405 = vsyncpa [#allocation4 + $0x1], 1 }

</bundles_post_ra>
